<compile_context>
chip_gen: v6e
topology: v6e:2x2x1
jax: 0.10.0
libtpu: 0.0.40
codegen_flags: <defaults>
</compile_context>

<pallas_src>
import numpy as np
import jax
import jax.numpy as jnp
from jax import lax
from jax.experimental import pallas as pl
from jax.experimental.pallas import tpu as pltpu


# ---------------------------------------------------------------------------
# Kernel 1: learned adjacency -> off-diagonal edge weights (grid-less, tiny)
# ---------------------------------------------------------------------------
def _edge_weight_kernel(logits_ref, slab_ref):
    n = logits_ref.shape[0]
    s = jax.nn.sigmoid(logits_ref[...])            # EUP transcendental
    adj = (s + s.T) * 0.5                          # XLU transpose + VALU
    # Row-major off-diagonal extraction without flatten/gather:
    #   slab[i, c] = adj[i, c]     if c <  i
    #              = adj[i, c + 1] if c >= i
    # Flattened row-major this is exactly dense_to_sparse's edge order.
    row = lax.broadcasted_iota(jnp.int32, (n, n - 1), 0)
    col = lax.broadcasted_iota(jnp.int32, (n, n - 1), 1)
    slab_ref[...] = jnp.where(col < row, adj[:, : n - 1], adj[:, 1:])


def learned_edge_weights(adj_logits: jax.Array) -> jax.Array:
    """adj_logits (N, N) -> edge_weight (N*(N-1),), row-major off-diagonal order."""
    N = adj_logits.shape[0]
    slab = pl.pallas_call(
        _edge_weight_kernel,
        out_shape=jax.ShapeDtypeStruct((N, N - 1), jnp.float32),
    )(adj_logits.astype(jnp.float32))
    return slab.reshape(-1)                        # free contiguous reshape in XLA


# ---------------------------------------------------------------------------
# Kernel 2: node-feature permute (B, F, N) -> (B, N, F), lane-dense when possible
# ---------------------------------------------------------------------------
def _permute_lane_dense_kernel(x_ref, out_ref):
    bb, f, n = x_ref.shape
    # (Bb, F, N) -> (Bb, N, F) -> (Bb, N*F): the flattened minor dim is a multiple of
    # 128, so the store is a full-width (unmasked) vst instead of an F-lane vst.msk.
    out_ref[...] = jnp.transpose(x_ref[...], (0, 2, 1)).reshape(bb, n * f)


def _permute_kernel(x_ref, out_ref):
    out_ref[...] = jnp.transpose(x_ref[...], (0, 2, 1))


def _vmem_limit_bytes() -> int:
    """Generation-aware scoped-VMEM limit (~3/4 of physical, capped)."""
    cap = 64 * 1024 * 1024                         # conservative default (v7x per-TC VMEM)
    try:
        info = pltpu.get_tpu_info()
        cap = int(getattr(info, "vmem_capacity_bytes", cap) or cap)
    except Exception:
        pass
    return min((cap * 3) // 4, 112 * 1024 * 1024)  # ~48 MiB on v7x, ~96 MiB on v5e/v6e


def _pick_batch_block(B: int, F: int, N: int, itemsize: int, block_budget: int) -> int:
    """Largest batch block whose double-buffered in+out feature blocks fit the budget."""
    per_graph = 2 * 2 * F * N * itemsize           # (in block + out block) x double-buffer
    bb = max(1, block_budget // per_graph)
    if bb >= B:
        return B
    # Keep partial batch blocks sublane-friendly for the 2-D lane-dense output.
    return max(1, (bb // 8) * 8) if bb >= 8 else bb


def _permute_call(x: jax.Array, Bb: int, lane_dense: bool, vmem_limit: int) -> jax.Array:
    B, F, N = x.shape
    grid = (pl.cdiv(B, Bb),)                       # Bb need not divide B (masked tail)
    cp = pltpu.CompilerParams(
        dimension_semantics=("parallel",),         # adj decoupled -> batch axis is parallel
        vmem_limit_bytes=vmem_limit,
    )
    if lane_dense:
        return pl.pallas_call(
            _permute_lane_dense_kernel,
            out_shape=jax.ShapeDtypeStruct((B, N * F), x.dtype),
            grid=grid,
            in_specs=[pl.BlockSpec((Bb, F, N), lambda b: (b, 0, 0))],
            out_specs=pl.BlockSpec((Bb, N * F), lambda b: (b, 0)),
            compiler_params=cp,
        )(x)
    return pl.pallas_call(
        _permute_kernel,
        out_shape=jax.ShapeDtypeStruct((B, N, F), x.dtype),
        grid=grid,
        in_specs=[pl.BlockSpec((Bb, F, N), lambda b: (b, 0, 0))],
        out_specs=pl.BlockSpec((Bb, N, F), lambda b: (b, 0, 0)),
        compiler_params=cp,
    )(x)


def prepare_node_features(x: jax.Array) -> jax.Array:
    """(B, F, N) -> stacked node features (B*N, F) via the Pallas permute kernel."""
    B, F, N = x.shape
    vmem_limit = _vmem_limit_bytes()
    Bb = _pick_batch_block(B, F, N, x.dtype.itemsize, vmem_limit // 2)
    lane_dense = (F < 128) and ((N * F) % 128 == 0) and (Bb == B or Bb % 8 == 0)
    if lane_dense:
        try:
            return _permute_call(x, Bb, True, vmem_limit).reshape(B * N, F)
        except Exception:
            pass   # in-kernel minor-dim reshape failed to lower -> 3-D-block fallback
    return _permute_call(x, Bb, False, vmem_limit).reshape(B * N, F)


# ---------------------------------------------------------------------------
# Static (host-side) graph structure: depends only on (B, N)
# ---------------------------------------------------------------------------
def _static_edge_structure(B: int, N: int):
    """Row-major off-diagonal edge_index (per-graph offset b*N) and PyG batch vector."""
    rows, cols = np.nonzero(1 - np.eye(N, dtype=np.int64))   # row-major off-diag order
    offsets = (np.arange(B, dtype=np.int64) * N)[:, None]
    edge_index = np.stack(
        [(rows[None, :] + offsets).reshape(-1), (cols[None, :] + offsets).reshape(-1)],
        axis=0,
    ).astype(np.int32)                                        # (2, B * N*(N-1))
    batch_vec = np.repeat(np.arange(B, dtype=np.int32), N)    # (B*N,)
    return edge_index, batch_vec


# ---------------------------------------------------------------------------
# Forward: dense_to_sparse + Batch.from_data_list glue (static shapes)
# ---------------------------------------------------------------------------
def learnable_graph_learner_forward(x: jax.Array, adj_logits: jax.Array, *,
                                    force_pallas: bool = False,
                                    min_pallas_elements: int = 256 * 1024):
    """Returns a dict mimicking torch_geometric.data.Batch fields (use_windows=False)."""
    # TODO(synk): use_windows=True (sliding-window unfold) path is not implemented here.
    B, F, N = x.shape
    assert adj_logits.shape == (N, N)

    use_pallas = force_pallas or (x.size >= min_pallas_elements)
    if use_pallas:
        edge_weight = learned_edge_weights(adj_logits)        # (E,)
        x_stacked = prepare_node_features(x)                  # (B*N, F)
    else:
        # Tiny-shape fast path: the work is launch/DMA-setup dominated, plain XLA wins.
        s = jax.nn.sigmoid(adj_logits.astype(jnp.float32))
        adj = (s + s.T) * 0.5
        edge_weight = adj.reshape(-1)[:-1].reshape(N - 1, N + 1)[:, 1:].reshape(-1)
        x_stacked = jnp.transpose(x, (0, 2, 1)).reshape(B * N, F)

    # dense_to_sparse: sigmoid(finite) > 0, so the nonzero set is exactly all off-diagonal
    # entries -> static shapes. NOTE: exact-zero sigmoid underflow (logits <~ -88 in f32)
    # would make PyTorch drop edges; unguarded here (JAX shapes must stay static).
    edge_index_np, batch_np = _static_edge_structure(B, N)    # baked constants
    E = N * (N - 1)
    # Same weights for every graph; broadcast (no gather) then flatten to (B*E,).
    edge_attr = jnp.broadcast_to(edge_weight, (B, E)).reshape(-1)

    return {
        "x": x_stacked,
        "edge_index": jnp.asarray(edge_index_np),   # int32 (PyG uses int64/torch.long)
        "edge_attr": edge_attr,
        "batch": jnp.asarray(batch_np),
        "num_graphs": B,
    }


if __name__ == "__main__":
    # Small shapes consistent with the module: B=2 graphs, F=16 features, N=8 nodes.
    B, F, N = 2, 16, 8
    key = jax.random.PRNGKey(0)
    k_x, k_adj = jax.random.split(key)

    x = jax.random.normal(k_x, (B, F, N), dtype=jnp.float32)          # (B, F, N)
    adj_logits = jax.random.normal(k_adj, (N, N), dtype=jnp.float32)  # nn.Parameter(randn(N,N))

    # Force the Pallas path: at these toy shapes the size threshold would otherwise
    # route to the pure-XLA fast path and the kernels would not run.
    out = learnable_graph_learner_forward(x, adj_logits, force_pallas=True)
    jax.block_until_ready(out["x"])
    jax.block_until_ready(out["edge_attr"])

    # Pure-JAX reference.
    ref_feats = jnp.transpose(x, (0, 2, 1)).reshape(B * N, F)
    s = jax.nn.sigmoid(adj_logits)
    ref_adj = np.asarray((s + s.T) / 2.0 * (1.0 - jnp.eye(N)))
    E = N * (N - 1)

    assert out["x"].shape == (B * N, F)
    assert out["edge_index"].shape == (2, B * E)
    assert out["edge_attr"].shape == (B * E,)
    assert out["batch"].shape == (B * N,)
    assert jnp.allclose(out["x"], ref_feats, atol=1e-6)

    ei = np.asarray(out["edge_index"])
    ew = np.asarray(out["edge_attr"])
    for b in range(B):
        r = ei[0, b * E:(b + 1) * E] - b * N
        c = ei[1, b * E:(b + 1) * E] - b * N
        assert np.all(r != c)                                   # no self-loops
        assert np.allclose(ew[b * E:(b + 1) * E], ref_adj[r, c], atol=1e-6)
    assert np.array_equal(np.asarray(out["batch"]), np.repeat(np.arange(B), N))

    # The small-shape XLA fast path must agree with the Pallas path.
    out_fast = learnable_graph_learner_forward(x, adj_logits)
    assert jnp.allclose(out_fast["x"], out["x"], atol=1e-6)
    assert jnp.allclose(out_fast["edge_attr"], out["edge_attr"], atol=1e-6)

    print("KERNEL_OK")
</pallas_src>

<mosaic_0001>
module attributes {stable_mosaic.version = 11 : i64} {
  func.func @_edge_weight_kernel(%arg0: memref<8x8xf32, #tpu.memory_space<vmem>>, %arg1: memref<8x7xf32, #tpu.memory_space<vmem>>) attributes {dimension_semantics = [], scalar_prefetch = 0 : i64, scratch_operands = 0 : i64, tpu.core_type = #tpu.core_type<tc>} {
    %c0 = arith.constant 0 : index
    %c0_0 = arith.constant 0 : index
    %0 = vector.load %arg0[%c0, %c0_0] : memref<8x8xf32, #tpu.memory_space<vmem>>, vector<8x8xf32>
    %1 = arith.negf %0 : vector<8x8xf32>
    %2 = math.exp %1 : vector<8x8xf32>
    %cst = arith.constant 1.000000e+00 : f32
    %3 = vector.broadcast %cst : f32 to vector<8x8xf32>
    %4 = arith.addf %3, %2 : vector<8x8xf32>
    %5 = arith.divf %3, %4 : vector<8x8xf32>
    %6 = tpu.transpose %5, [1, 0] : vector<8x8xf32> -> vector<8x8xf32>
    %7 = arith.addf %5, %6 : vector<8x8xf32>
    %cst_1 = arith.constant 5.000000e-01 : f32
    %8 = vector.broadcast %cst_1 : f32 to vector<8x8xf32>
    %9 = arith.mulf %7, %8 : vector<8x8xf32>
    %10 = tpu.iota {dimensions = array<i32: 0>} : vector<8x7xi32>
    %11 = tpu.iota {dimensions = array<i32: 1>} : vector<8x7xi32>
    %12 = arith.cmpi slt, %11, %10 : vector<8x7xi32>
    %13 = vector.extract_strided_slice %9 {offsets = [0, 0], sizes = [8, 7], strides = [1, 1]} : vector<8x8xf32> to vector<8x7xf32>
    %14 = vector.extract_strided_slice %9 {offsets = [0, 1], sizes = [8, 7], strides = [1, 1]} : vector<8x8xf32> to vector<8x7xf32>
    %15 = arith.select %12, %13, %14 : vector<8x7xi1>, vector<8x7xf32>
    %c0_2 = arith.constant 0 : index
    %c0_3 = arith.constant 0 : index
    %16 = vector.load %arg1[%c0_2, %c0_3] : memref<8x7xf32, #tpu.memory_space<vmem>>, vector<8x7xf32>
    tpu.vector_store %arg1[%c0_2, %c0_3], %15 {strides = array<i32>} : memref<8x7xf32, #tpu.memory_space<vmem>>, vector<8x7xf32>,
    return
  }
}

</mosaic_0001>

<bundles_post_ra>
// kernel: tpu_custom_call.1
= control target key start
LH: loop header
LB: loop body
LE: loop exit
PB: predicated region body
PF: predicated region fallthrough
CT: control target
= control target key end

     0   :  { %6 = vsyncpa [#allocation3], 0  ;;  %s161_s0 = inlined_call_operand.hbm [shape: f32[8,8], index: 0, kind: input, shape index: {}]   ;;  %s162_s1 = inlined_call_operand.hbm [shape: f32[8,7], index: 1, kind: output, shape index: {}]  }
   0x1   :  { %7 = vsyncpa [#allocation4], 0  ;;  %s142_s6 = smov [#allocation2]  }
   0x2   :  { %s14_s7 = sshll.u32 %s142_s6, 4  ;;  %s15_s7 = int_to_ptr.vmem [resolvable:$true] %s14_s7 }
   0x3   :  { %s106_s8 = scalar_lea.vmem %s15_s7, 128  ;;  %p111_p1 = scmp.lt.s32.totalorder %s15_s7, %s15_s7 }
   0x4   :  { %p107_p0 = scmp.ne.s32.totalorder %s15_s7, %s106_s8  ;;  %p112_p2 = scmp.lt.s32.totalorder %s106_s8, %s106_s8 }
   0x6   :  { %p113_p3 = por %p112_p2, %p111_p1 }
   0x8   :  { %p114_p4 = pnand %p113_p3, %p107_p0 }
   0xa   :  { %117 = shalt.err (!%p114_p4)
}
   0xb   :  { %17 = dma.hbm_to_vmem [thread:$0]  %s161_s0, 128, %s15_s7, [#allocation3]  }
   0xc   :  { %138 = dma.done.wait [#allocation3], 128  }
   0xd   :  { %139 = vsyncadd [#allocation3], 4294967168  ;;  %v21_v0 = vld [vmem:[#allocation2] sm:$0xff]  ;;  %s143_s11 = smov 127   ;;  %v62_v8 = vlaneseq  ;;  %s144_s12 = smov [#allocation5]   ;;  %vm72_vm1 = vcmask 56320  }
   0xe   :  { %v89_v1 = vmul.f32 -1.442695, %v21_v0  ;;  %s80_s0 = sshll.u32 %s144_s12, 4  ;;  %s81_s0 = int_to_ptr.vmem [resolvable:$true] %s80_s0 }
   0xf   :  { %v63_v9 = vshrl.u32 %v62_v8, 7  ;;  %v65_v10 = vand.u32 127, %v62_v8  ;;  %s118_s13 = scalar_lea.vmem %s81_s0, 128  ;;  %p123_p6 = scmp.lt.s32.totalorder %s81_s0, %s81_s0 }
  0x10   :  { %94 = vpow2.f32 %v89_v1  ;;  %p119_p5 = scmp.ne.s32.totalorder %s81_s0, %s118_s13  ;;  %p124_p7 = scmp.lt.s32.totalorder %s118_s13, %s118_s13 }
  0x11   :  { %vm66_vm0 = vcmp.lt.s32.totalorder %v65_v10, %v63_v9 }
  0x12   :  { %p125_p8 = por %p124_p7, %p123_p6 }
  0x14   :  { %p126_p9 = pnand %p125_p8, %p119_p5 }
  0x1d   :  { %v95_v2 = vpop.eup %94 }
  0x1e   :  { %v25_v3 = vadd.f32 1.0, %v95_v2 }
  0x20   :  { %96 = vrcp.f32 %v25_v3 }
  0x2d   :  { %v97_v4 = vpop.eup %96 }
  0x2e   :  { %28 = vxpose.xlu0.b32.start.end [1/1] (short) (narrow) %v97_v4, 8 }
  0xaa   :  { %v44_v5 = vpop.trf.xlu0 }
  0xab   :  { %v60_v6 = vadd.f32 %v97_v4, %v44_v5 }
  0xad   :  { %v61_v7 = vmul.f32 0.5, %v60_v6 }
  0xaf   :  { %68 = vrot.lane.b32.xlu0 %v61_v7, %s143_s11 }
 0x121   :  { %v69_v11 = vpop.permute.xlu0 %68 }
 0x122   :  { %v71_v12 = vsel %vm66_vm0, %v61_v7, %v69_v11 }
 0x123   :  { %73 = vst.msk [vmem:[#allocation5] sm:$0xff] %vm72_vm1, %v71_v12 }
 0x124   :  { %129 = shalt.err (!%p126_p9)
}
 0x125   :  { %83 = dma.vmem_to_hbm [thread:$0]  %s81_s0, 128, %s162_s1, [#allocation4]  }
 0x126   :  { %140 = dma.done.wait [#allocation4], 128  }
 0x127   :  { %141 = vsyncadd [#allocation4], 4294967168 }
 0x128   :  { %87 = vsyncpa [#allocation3], 1 }
 0x129   :  { %88 = vsyncpa [#allocation4], 1 }

</bundles_post_ra>
